<compile_context>
chip_gen: v5e
topology: v5e:2x2
jax: 0.10.0
libtpu: 0.0.40
codegen_flags: <defaults>
</compile_context>

<pallas_src>
import math
from typing import NamedTuple

import jax
import jax.numpy as jnp
from jax.experimental import pallas as pl
from jax.experimental.pallas import tpu as pltpu

LANE = 128
_FEATURE_TILE_CAP = 512  # cap for d_in / d_hid / d_out tiles (128-aligned)


def _cdiv(a, b):
    return -(-a // b)


def _round_up(x, m):
    return _cdiv(x, m) * m


def _balanced_tile(dim, cap, align):
    """Tile size (multiple of `align`, <= cap) that keeps padding small.

    Returns (tile, padded_dim) with padded_dim = n_tiles * tile >= dim.
    """
    dim_a = _round_up(max(dim, 1), align)
    n = _cdiv(dim_a, cap)
    tile = _round_up(_cdiv(dim_a, n), align)
    return tile, n * tile


def _maybe_pad2d(a, rows, cols):
    pr, pc = rows - a.shape[0], cols - a.shape[1]
    if pr == 0 and pc == 0:
        return a
    return jnp.pad(a, ((0, pr), (0, pc)))


def _vmem_budget_bytes():
    """Per-generation physical VMEM (64 MiB on v7x, 128 MiB on v5e/v6e)."""
    try:
        info = pltpu.get_tpu_info()
        cap = getattr(info, "vmem_capacity_bytes", None)
        if cap:
            return int(cap)
    except Exception:
        pass
    return 128 * 1024 * 1024


def _estimate_vmem_bytes(block_b, block_in, block_h, block_out,
                         x_item, w_item, out_item, acc_in_out):
    """Rough VMEM footprint: double-buffered pipelined tiles + scratch."""
    dbl = 2  # default double buffering
    total = 0
    total += dbl * block_b * block_in * x_item        # x tile
    total += dbl * block_in * block_h * w_item        # W1 tile
    total += dbl * 8 * block_h * 4                    # b1 tile (sublane padded)
    total += dbl * block_h * block_out * w_item       # W2 tile
    total += dbl * 8 * block_out * 4                  # b2 tile
    total += dbl * block_b * block_out * out_item     # out tile
    total += block_b * block_h * 4                    # hidden accumulator (f32)
    if not acc_in_out:
        total += block_b * block_out * 4              # output accumulator (f32)
    return total


class ProjectionParams(NamedTuple):
    w1: jax.Array   # [d_in_p,  d_hid_p]  padded (and possibly bf16-cast)
    b1: jax.Array   # [1, d_hid_p]        f32
    w2: jax.Array   # [d_hid_p, d_out_p]
    b2: jax.Array   # [1, d_out_p]        f32
    d_in: int
    d_hid: int
    d_out: int
    block_in: int
    block_h: int
    block_out: int


def prepare_projection_params(w1, b1, w2, b2, *, compute_dtype=None):
    """Pad (and optionally cast) the weights ONCE.

    w1: [input_dims, hidden_dims], b1: [hidden_dims]
    w2: [hidden_dims, out_dims],   b2: [out_dims]
    """
    d_in, d_hid = w1.shape
    d_out = w2.shape[1]
    block_in, d_in_p = _balanced_tile(d_in, _FEATURE_TILE_CAP, LANE)
    block_h, d_hid_p = _balanced_tile(d_hid, _FEATURE_TILE_CAP, LANE)
    block_out, d_out_p = _balanced_tile(d_out, _FEATURE_TILE_CAP, LANE)

    w_dtype = compute_dtype if compute_dtype is not None else w1.dtype
    w1_p = _maybe_pad2d(w1.astype(w_dtype), d_in_p, d_hid_p)
    w2_p = _maybe_pad2d(w2.astype(w_dtype), d_hid_p, d_out_p)
    # Biases stay f32: they are added to the f32 accumulators.
    b1_p = _maybe_pad2d(b1.astype(jnp.float32).reshape(1, -1), 1, d_hid_p)
    b2_p = _maybe_pad2d(b2.astype(jnp.float32).reshape(1, -1), 1, d_out_p)
    return ProjectionParams(w1_p, b1_p, w2_p, b2_p, d_in, d_hid, d_out,
                            block_in, block_h, block_out)


def _make_projection_kernel(acc_in_out):
    """Grid: (batch_tile i, out_tile j, hidden_tile t, in_tile k)."""

    def kernel(x_ref, w1_ref, b1_ref, w2_ref, b2_ref, o_ref, *scratch):
        if acc_in_out:
            (h_ref,) = scratch
            acc_ref = o_ref               # f32 output accumulates in place
        else:
            h_ref, acc_ref = scratch

        t = pl.program_id(2)              # hidden-dim reduction tile
        k = pl.program_id(3)              # input-dim reduction tile
        nt = pl.num_programs(2)
        nk = pl.num_programs(3)

        # Fold b2 into the output accumulator init (once per (i, j) tile).
        @pl.when(jnp.logical_and(t == 0, k == 0))
        def _():
            acc_ref[...] = jnp.broadcast_to(
                b2_ref[...].astype(jnp.float32),
                acc_ref.shape).astype(acc_ref.dtype)

        # First linear: accumulate this hidden tile over the d_in tiles (f32).
        @pl.when(k == 0)
        def _():
            h_ref[...] = jnp.zeros_like(h_ref)

        x = x_ref[...]
        if x.dtype != w1_ref.dtype:       # bf16 MXU path: cast activations
            x = x.astype(w1_ref.dtype)
        h_ref[...] += jnp.dot(x, w1_ref[...],
                              preferred_element_type=jnp.float32)

        # Hidden tile fully reduced: bias + ReLU, then the partial second
        # linear accumulated into the output accumulator.
        @pl.when(k == nk - 1)
        def _():
            h = jnp.maximum(h_ref[...] + b1_ref[...], 0.0)
            part = jnp.dot(h.astype(w2_ref.dtype), w2_ref[...],
                           preferred_element_type=jnp.float32)
            acc_ref[...] += part.astype(acc_ref.dtype)

            if not acc_in_out:
                @pl.when(t == nt - 1)
                def _():
                    o_ref[...] = acc_ref[...].astype(o_ref.dtype)

    return kernel


def projection_forward_prepared(x, params, *, block_b=None,
                                vmem_limit_bytes=None):
    """Apply the projection head to x [..., input_dims] -> [..., out_dims]."""
    orig_shape = x.shape
    d_in, d_out = params.d_in, params.d_out
    assert orig_shape[-1] == d_in, "last dim of x must equal input_dims"
    x2 = x.reshape(-1, d_in)
    B = x2.shape[0]

    d_in_p, d_hid_p = params.w1.shape
    d_out_p = params.w2.shape[1]
    block_in, block_h, block_out = (params.block_in, params.block_h,
                                    params.block_out)

    out_dtype = x.dtype
    acc_in_out = (jnp.dtype(out_dtype) == jnp.dtype(jnp.float32))

    x_item = jnp.dtype(x.dtype).itemsize
    w_item = jnp.dtype(params.w1.dtype).itemsize
    out_item = jnp.dtype(out_dtype).itemsize

    # ---- per-generation VMEM budget -> scoped limit + batch-tile cap ------
    budget = _vmem_budget_bytes()
    if vmem_limit_bytes is None:
        vmem_limit_bytes = max(32 * 1024 * 1024,
                               min(budget * 3 // 4, 96 * 1024 * 1024))

    sublane = {4: 8, 2: 16, 1: 32}.get(x_item, 8)
    if block_b is None:
        cap_b = 2048 if budget >= (96 << 20) else 1024
        while cap_b > sublane and _estimate_vmem_bytes(
                cap_b, block_in, block_h, block_out,
                x_item, w_item, out_item,
                acc_in_out) > int(vmem_limit_bytes * 0.6):
            cap_b //= 2
        cap_b = max(cap_b, sublane)
        block_b, _ = _balanced_tile(B, cap_b, sublane)   # balanced last tile
    block_b = _round_up(block_b, sublane)
    B_p = _round_up(B, block_b)

    # ---- pad activations only when needed (padding contributes exactly 0) -
    x_p = x2
    if B_p != B or d_in_p != d_in:
        x_p = jnp.pad(x2, ((0, B_p - B), (0, d_in_p - d_in)))

    grid = (B_p // block_b, d_out_p // block_out,
            d_hid_p // block_h, d_in_p // block_in)

    scratch_shapes = [pltpu.VMEM((block_b, block_h), jnp.float32)]
    if not acc_in_out:
        scratch_shapes.append(pltpu.VMEM((block_b, block_out), jnp.float32))

    out_p = pl.pallas_call(
        _make_projection_kernel(acc_in_out),
        out_shape=jax.ShapeDtypeStruct((B_p, d_out_p), out_dtype),
        grid_spec=pltpu.PrefetchScalarGridSpec(
            num_scalar_prefetch=0,
            grid=grid,
            in_specs=[
                pl.BlockSpec((block_b, block_in),
                             lambda i, j, t, k: (i, k)),          # x
                pl.BlockSpec((block_in, block_h),
                             lambda i, j, t, k: (k, t)),          # W1
                pl.BlockSpec((1, block_h),
                             lambda i, j, t, k: (0, t)),          # b1
                pl.BlockSpec((block_h, block_out),
                             lambda i, j, t, k: (t, j)),          # W2
                pl.BlockSpec((1, block_out),
                             lambda i, j, t, k: (0, j)),          # b2
            ],
            out_specs=pl.BlockSpec((block_b, block_out),
                                   lambda i, j, t, k: (i, j)),
            scratch_shapes=scratch_shapes,
        ),
        compiler_params=pltpu.CompilerParams(
            dimension_semantics=("parallel", "parallel",
                                 "arbitrary", "arbitrary"),
            vmem_limit_bytes=int(vmem_limit_bytes),
        ),
    )(x_p, params.w1, params.b1, params.w2, params.b2)

    out = out_p[:B, :d_out]
    return out.reshape(orig_shape[:-1] + (d_out,))


def projection_forward(x, w1, b1, w2, b2, *, compute_dtype=None, block_b=None,
                       vmem_limit_bytes=None):
    """Convenience wrapper (pads weights on every call — prefer preparing
    the params once with `prepare_projection_params` for repeated calls)."""
    params = prepare_projection_params(w1, b1, w2, b2,
                                       compute_dtype=compute_dtype)
    return projection_forward_prepared(x, params, block_b=block_b,
                                       vmem_limit_bytes=vmem_limit_bytes)


def init_projection_params(key, input_dims, hidden_dims, out_dims,
                           dtype=jnp.float32):
    """Deterministic init matching nn.Linear's default (Kaiming-uniform-ish)."""
    k1, k2, k3, k4 = jax.random.split(key, 4)
    bound1 = 1.0 / math.sqrt(input_dims)
    bound2 = 1.0 / math.sqrt(hidden_dims)
    # Stored as [in, out] (transpose of PyTorch's [out, in]).
    w1 = jax.random.uniform(k1, (input_dims, hidden_dims), dtype,
                            minval=-bound1, maxval=bound1)
    b1 = jax.random.uniform(k2, (hidden_dims,), dtype,
                            minval=-bound1, maxval=bound1)
    w2 = jax.random.uniform(k3, (hidden_dims, out_dims), dtype,
                            minval=-bound2, maxval=bound2)
    b2 = jax.random.uniform(k4, (out_dims,), dtype,
                            minval=-bound2, maxval=bound2)
    return w1, b1, w2, b2


def projection_reference(x, w1, b1, w2, b2):
    h = jnp.maximum(x @ w1 + b1, 0.0)
    return h @ w2 + b2


if __name__ == "__main__":
    key = jax.random.PRNGKey(0)
    kx, kx2, kx3, kp = jax.random.split(key, 4)

    batch = 8
    input_dims = 32
    hidden_dims = 64
    out_dims = 16

    w1, b1, w2, b2 = init_projection_params(kp, input_dims, hidden_dims,
                                            out_dims)
    params = prepare_projection_params(w1, b1, w2, b2)   # pad weights once

    # Case 1: small batch, f32 (exercises feature-dim padding to 128 lanes).
    x = jax.random.normal(kx, (batch, input_dims), jnp.float32)
    out = jax.block_until_ready(projection_forward_prepared(x, params))
    ref = projection_reference(x, w1, b1, w2, b2)
    assert out.shape == (batch, out_dims)
    assert jnp.allclose(out, ref, atol=1e-4, rtol=1e-4)

    # Case 2: batch not a multiple of the sublane/tile (remainder padding).
    x2 = jax.random.normal(kx2, (batch + 3, input_dims), jnp.float32)
    out2 = jax.block_until_ready(projection_forward_prepared(x2, params))
    ref2 = projection_reference(x2, w1, b1, w2, b2)
    assert out2.shape == (batch + 3, out_dims)
    assert jnp.allclose(out2, ref2, atol=1e-4, rtol=1e-4)

    # Case 3: leading batch dims (nn.Linear applies to the last dim).
    x3 = jax.random.normal(kx3, (2, 5, input_dims), jnp.float32)
    out3 = jax.block_until_ready(projection_forward_prepared(x3, params))
    ref3 = projection_reference(x3.reshape(-1, input_dims),
                                w1, b1, w2, b2).reshape(2, 5, out_dims)
    assert out3.shape == (2, 5, out_dims)
    assert jnp.allclose(out3, ref3, atol=1e-4, rtol=1e-4)

    # Case 4: bf16 MXU path (weights cast once at prepare; f32 accumulation).
    params_bf16 = prepare_projection_params(w1, b1, w2, b2,
                                            compute_dtype=jnp.bfloat16)
    out4 = jax.block_until_ready(projection_forward_prepared(x, params_bf16))
    assert out4.shape == (batch, out_dims)
    assert jnp.allclose(out4, ref, atol=5e-2, rtol=5e-2)

    print("KERNEL_OK")
</pallas_src>

<mosaic_0001>
module attributes {stable_mosaic.version = 11 : i64} {
  func.func @kernel(%arg0: i32, %arg1: i32, %arg2: i32, %arg3: i32, %arg4: memref<8x128xf32, #tpu.memory_space<vmem>>, %arg5: memref<128x128xf32, #tpu.memory_space<vmem>>, %arg6: memref<1x128xf32, #tpu.memory_space<vmem>>, %arg7: memref<128x128xf32, #tpu.memory_space<vmem>>, %arg8: memref<1x128xf32, #tpu.memory_space<vmem>>, %arg9: memref<8x128xf32, #tpu.memory_space<vmem>>, %arg10: memref<8x128xf32, #tpu.memory_space<vmem>>) attributes {dimension_semantics = [#tpu.dimension_semantics<parallel>, #tpu.dimension_semantics<parallel>, #tpu.dimension_semantics<arbitrary>, #tpu.dimension_semantics<arbitrary>], iteration_bounds = array<i64: 1, 1, 1, 1>, scalar_prefetch = 0 : i64, scratch_operands = 1 : i64, tpu.core_type = #tpu.core_type<tc>, window_params = [{transform_indices = @transform_0, window_bounds = array<i64: 8, 128>}, {transform_indices = @transform_1, window_bounds = array<i64: 128, 128>}, {transform_indices = @transform_2, window_bounds = array<i64: 1, 128>}, {transform_indices = @transform_3, window_bounds = array<i64: 128, 128>}, {transform_indices = @transform_4, window_bounds = array<i64: 1, 128>}, {transform_indices = @transform_5, window_bounds = array<i64: 8, 128>}]} {
    %c0_i32 = arith.constant 0 : i32
    %0 = arith.cmpi eq, %arg2, %c0_i32 : i32
    %c0_i32_0 = arith.constant 0 : i32
    %1 = arith.cmpi eq, %arg3, %c0_i32_0 : i32
    %2 = arith.andi %0, %1 : i1
    %3 = arith.extui %2 : i1 to i32
    %c0_i32_1 = arith.constant 0 : i32
    %4 = arith.cmpi ne, %3, %c0_i32_1 : i32
    scf.if %4 {
      %c0_13 = arith.constant 0 : index
      %c0_14 = arith.constant 0 : index
      %17 = vector.load %arg8[%c0_13, %c0_14] : memref<1x128xf32, #tpu.memory_space<vmem>>, vector<1x128xf32>
      %18 = vector.shape_cast %17 : vector<1x128xf32> to vector<1x128xf32>
      %19 = vector.broadcast %18 : vector<1x128xf32> to vector<8x128xf32>
      %c0_15 = arith.constant 0 : index
      %c0_16 = arith.constant 0 : index
      %20 = vector.load %arg9[%c0_15, %c0_16] : memref<8x128xf32, #tpu.memory_space<vmem>>, vector<8x128xf32>
      tpu.vector_store %arg9[%c0_15, %c0_16], %19 {strides = array<i32>} : memref<8x128xf32, #tpu.memory_space<vmem>>, vector<8x128xf32>,
    } else {
    }
    %c0_i32_2 = arith.constant 0 : i32
    %5 = arith.cmpi eq, %arg3, %c0_i32_2 : i32
    %6 = arith.extui %5 : i1 to i32
    %c0_i32_3 = arith.constant 0 : i32
    %7 = arith.cmpi ne, %6, %c0_i32_3 : i32
    scf.if %7 {
      %cst_13 = arith.constant 0.000000e+00 : f32
      %17 = vector.broadcast %cst_13 : f32 to vector<8x128xf32>
      %c0_14 = arith.constant 0 : index
      %c0_15 = arith.constant 0 : index
      %18 = vector.load %arg10[%c0_14, %c0_15] : memref<8x128xf32, #tpu.memory_space<vmem>>, vector<8x128xf32>
      tpu.vector_store %arg10[%c0_14, %c0_15], %17 {strides = array<i32>} : memref<8x128xf32, #tpu.memory_space<vmem>>, vector<8x128xf32>,
    } else {
    }
    %c0 = arith.constant 0 : index
    %c0_4 = arith.constant 0 : index
    %8 = vector.load %arg4[%c0, %c0_4] : memref<8x128xf32, #tpu.memory_space<vmem>>, vector<8x128xf32>
    %c0_5 = arith.constant 0 : index
    %c0_6 = arith.constant 0 : index
    %9 = vector.load %arg10[%c0_5, %c0_6] : memref<8x128xf32, #tpu.memory_space<vmem>>, vector<8x128xf32>
    %c0_7 = arith.constant 0 : index
    %c0_8 = arith.constant 0 : index
    %10 = vector.load %arg5[%c0_7, %c0_8] : memref<128x128xf32, #tpu.memory_space<vmem>>, vector<128x128xf32>
    %cst = arith.constant dense<0.000000e+00> : vector<8x128xf32>
    %11 = tpu.matmul %8, %10, %cst {dimension_numbers = #tpu.dot_dimension_numbers<[1], [0], [0], [1], [0, 0, 1, 1], [], []>} : vector<8x128xf32>, vector<128x128xf32>, vector<8x128xf32> -> vector<8x128xf32>
    %12 = arith.addf %9, %11 : vector<8x128xf32>
    %c0_9 = arith.constant 0 : index
    %c0_10 = arith.constant 0 : index
    %13 = vector.load %arg10[%c0_9, %c0_10] : memref<8x128xf32, #tpu.memory_space<vmem>>, vector<8x128xf32>
    tpu.vector_store %arg10[%c0_9, %c0_10], %12 {strides = array<i32>} : memref<8x128xf32, #tpu.memory_space<vmem>>, vector<8x128xf32>,
    %c0_i32_11 = arith.constant 0 : i32
    %14 = arith.cmpi eq, %arg3, %c0_i32_11 : i32
    %15 = arith.extui %14 : i1 to i32
    %c0_i32_12 = arith.constant 0 : i32
    %16 = arith.cmpi ne, %15, %c0_i32_12 : i32
    scf.if %16 {
      %c0_13 = arith.constant 0 : index
      %c0_14 = arith.constant 0 : index
      %17 = vector.load %arg10[%c0_13, %c0_14] : memref<8x128xf32, #tpu.memory_space<vmem>>, vector<8x128xf32>
      %c0_15 = arith.constant 0 : index
      %c0_16 = arith.constant 0 : index
      %18 = vector.load %arg6[%c0_15, %c0_16] : memref<1x128xf32, #tpu.memory_space<vmem>>, vector<1x128xf32>
      %19 = vector.broadcast %18 : vector<1x128xf32> to vector<8x128xf32>
      %20 = arith.addf %17, %19 : vector<8x128xf32>
      %cst_17 = arith.constant 0.000000e+00 : f32
      %21 = vector.broadcast %cst_17 : f32 to vector<8x128xf32>
      %22 = arith.maximumf %20, %21 : vector<8x128xf32>
      %c0_18 = arith.constant 0 : index
      %c0_19 = arith.constant 0 : index
      %23 = vector.load %arg7[%c0_18, %c0_19] : memref<128x128xf32, #tpu.memory_space<vmem>>, vector<128x128xf32>
      %cst_20 = arith.constant dense<0.000000e+00> : vector<8x128xf32>
      %24 = tpu.matmul %22, %23, %cst_20 {dimension_numbers = #tpu.dot_dimension_numbers<[1], [0], [0], [1], [0, 0, 1, 1], [], []>} : vector<8x128xf32>, vector<128x128xf32>, vector<8x128xf32> -> vector<8x128xf32>
      %c0_21 = arith.constant 0 : index
      %c0_22 = arith.constant 0 : index
      %25 = vector.load %arg9[%c0_21, %c0_22] : memref<8x128xf32, #tpu.memory_space<vmem>>, vector<8x128xf32>
      %26 = arith.addf %25, %24 : vector<8x128xf32>
      %c0_23 = arith.constant 0 : index
      %c0_24 = arith.constant 0 : index
      %27 = vector.load %arg9[%c0_23, %c0_24] : memref<8x128xf32, #tpu.memory_space<vmem>>, vector<8x128xf32>
      tpu.vector_store %arg9[%c0_23, %c0_24], %26 {strides = array<i32>} : memref<8x128xf32, #tpu.memory_space<vmem>>, vector<8x128xf32>,
    } else {
    }
    return
  }
  func.func @transform_0(%arg0: i32, %arg1: i32, %arg2: i32, %arg3: i32) -> (i32, i32) {
    %c0_i32 = arith.constant 0 : i32
    return %arg0, %arg3 : i32, i32
  }
  func.func @transform_1(%arg0: i32, %arg1: i32, %arg2: i32, %arg3: i32) -> (i32, i32) {
    %c0_i32 = arith.constant 0 : i32
    return %arg3, %arg2 : i32, i32
  }
  func.func @transform_2(%arg0: i32, %arg1: i32, %arg2: i32, %arg3: i32) -> (i32, i32) {
    %c0_i32 = arith.constant 0 : i32
    %c0_i32_0 = arith.constant 0 : i32
    return %c0_i32, %arg2 : i32, i32
  }
  func.func @transform_3(%arg0: i32, %arg1: i32, %arg2: i32, %arg3: i32) -> (i32, i32) {
    %c0_i32 = arith.constant 0 : i32
    return %arg2, %arg1 : i32, i32
  }
  func.func @transform_4(%arg0: i32, %arg1: i32, %arg2: i32, %arg3: i32) -> (i32, i32) {
    %c0_i32 = arith.constant 0 : i32
    %c0_i32_0 = arith.constant 0 : i32
    return %c0_i32, %arg1 : i32, i32
  }
  func.func @transform_5(%arg0: i32, %arg1: i32, %arg2: i32, %arg3: i32) -> (i32, i32) {
    %c0_i32 = arith.constant 0 : i32
    return %arg0, %arg1 : i32, i32
  }
}

</mosaic_0001>

<bundles_post_ra>
// kernel: tpu_custom_call.1
= control target key start
LH: loop header
LB: loop body
LE: loop exit
PB: predicated region body
PF: predicated region fallthrough
CT: control target
= control target key end

     0   :  { %10 = vsyncpa [#allocation4], 0  ;;  %s352_s0 = inlined_call_operand.hbm [shape: f32[8,128], index: 0, kind: input, shape index: {}]   ;;  %s353_s1 = inlined_call_operand.hbm [shape: f32[128,128], index: 1, kind: input, shape index: {}]   ;;  %s354_s2 = inlined_call_operand.vmem [shape: f32[1,128], index: 2, kind: input, shape index: {}]   ;;  %s355_s3 = inlined_call_operand.hbm [shape: f32[128,128], index: 3, kind: input, shape index: {}]   ;;  %s356_s4 = inlined_call_operand.vmem [shape: f32[1,128], index: 4, kind: input, shape index: {}]   ;;  %s357_s5 = inlined_call_operand.hbm [shape: f32[8,128], index: 5, kind: output, shape index: {}]  }
   0x1   :  { %11 = vsyncpa [#allocation7], 0  ;;  %s28_s20 = sshll.u32 %s353_s1, 4  ;;  %s29_s20 = int_to_ptr.hbm [resolvable:$true] %s28_s20 }
   0x2   :  { %12 = vsyncpa [#allocation5], 0  ;;  %s298_s21 = smov [#allocation6]   ;;  %s18_s25 = sshll.u32 %s352_s0, 4  ;;  %s19_s25 = int_to_ptr.hbm [resolvable:$true] %s18_s25 }
   0x3   :  { %s30_s22 = sshll.u32 %s298_s21, 4  ;;  %s299_s26 = smov 128   ;;  %s31_s22 = int_to_ptr.vmem [resolvable:$true] %s30_s22 }
   0x4   :  { %s300_s27 = smov 8   ;;  %s301_s28 = smov [#allocation3]  }
   0x5   :  { %36 = dma.hbm_to_vmem [thread:$0]  %s29_s20, 2048, %s31_s22, [#allocation7], %s299_s26, %s299_s26, %s300_s27  }
   0x6   :  { %s20_s29 = sshll.u32 %s301_s28, 4  ;;  %s43_s7 = sshll.u32 %s355_s3, 4  ;;  %s21_s29 = int_to_ptr.vmem [resolvable:$true] %s20_s29  ;;  %s44_s7 = int_to_ptr.hbm [resolvable:$true] %s43_s7 }
   0x7   :  { %23 = dma.hbm_to_vmem [thread:$0]  %s19_s25, 128, %s21_s29, [#allocation4]  }
   0x8   :  { %s302_s1 = smov [#allocation8]  }
   0x9   :  { %s45_s8 = sshll.u32 %s302_s1, 4  ;;  %s46_s8 = int_to_ptr.vmem [resolvable:$true] %s45_s8 }
   0xa   :  { %51 = dma.hbm_to_vmem [thread:$0]  %s44_s7, 2048, %s46_s8, [#allocation7], %s299_s26, %s299_s26, %s300_s27  }
   0xb   :  { %292 = dma.done.wait [#allocation4], 128  }
   0xc   :  { %293 = vsyncadd [#allocation4], 4294967168 }
   0xd   :  { %294 = dma.done.wait [#allocation7], 4096  }
   0xe   :  { %295 = vsyncadd [#allocation7], 4294963200  ;;  %v98_v0 = vld [vmem:[#allocation6 + $0x78] sm:$0xff]  ;;  %v97_v1 = vld [vmem:[#allocation6 + $0x70] sm:$0xff]  ;;  %s303_s11 = smov [#allocation9]   ;;  %s177_s15 = sshll.u32 %s357_s5, 4  ;;  %s178_s15 = int_to_ptr.hbm [resolvable:$true] %s177_s15 }
   0xf   :  { %99 = vmatpush.msra.mxu0 %v98_v0  ;;  %v96_v2 = vld [vmem:[#allocation6 + $0x68] sm:$0xff]  ;;  %v95_v3 = vld [vmem:[#allocation6 + $0x60] sm:$0xff]  ;;  %v146_v4 = vld [vmem:[#allocation8 + $0x78] sm:$0xff]  ;;  %s175_s12 = sshll.u32 %s303_s11, 4  ;;  %s176_s12 = int_to_ptr.vmem [resolvable:$true] %s175_s12 }
  0x10   :  { %v94_v5 = vld [vmem:[#allocation6 + $0x58] sm:$0xff]  ;;  %147 = vmatpush.msra.mxu1 %v146_v4  ;;  %v145_v6 = vld [vmem:[#allocation8 + $0x70] sm:$0xff]  ;;  %v144_v7 = vld [vmem:[#allocation8 + $0x68] sm:$0xff] }
  0x11   :  { %100 = vmatpush.msra.mxu0 %v97_v1  ;;  %v93_v8 = vld [vmem:[#allocation6 + $0x50] sm:$0xff]  ;;  %v143_v9 = vld [vmem:[#allocation8 + $0x60] sm:$0xff]  ;;  %v92_v10 = vld [vmem:[#allocation6 + $0x48] sm:$0xff] }
  0x12   :  { %148 = vmatpush.msra.mxu1 %v145_v6  ;;  %v142_v11 = vld [vmem:[#allocation8 + $0x58] sm:$0xff]  ;;  %v91_v12 = vld [vmem:[#allocation6 + $0x40] sm:$0xff]  ;;  %v141_v13 = vld [vmem:[#allocation8 + $0x50] sm:$0xff] }
  0x13   :  { %101 = vmatpush.msra.mxu0 %v96_v2  ;;  %v90_v14 = vld [vmem:[#allocation6 + $0x38] sm:$0xff]  ;;  %v140_v15 = vld [vmem:[#allocation8 + $0x48] sm:$0xff]  ;;  %v89_v16 = vld [vmem:[#allocation6 + $0x30] sm:$0xff] }
  0x14   :  { %149 = vmatpush.msra.mxu1 %v144_v7  ;;  %v139_v17 = vld [vmem:[#allocation8 + $0x40] sm:$0xff]  ;;  %v88_v18 = vld [vmem:[#allocation6 + $0x28] sm:$0xff]  ;;  %v138_v19 = vld [vmem:[#allocation8 + $0x38] sm:$0xff] }
  0x15   :  { %102 = vmatpush.msra.mxu0 %v95_v3  ;;  %v87_v20 = vld [vmem:[#allocation6 + $0x20] sm:$0xff]  ;;  %v137_v21 = vld [vmem:[#allocation8 + $0x30] sm:$0xff]  ;;  %v86_v22 = vld [vmem:[#allocation6 + $0x18] sm:$0xff] }
  0x16   :  { %150 = vmatpush.msra.mxu1 %v143_v9  ;;  %v136_v23 = vld [vmem:[#allocation8 + $0x28] sm:$0xff]  ;;  %v85_v24 = vld [vmem:[#allocation6 + $0x10] sm:$0xff]  ;;  %v135_v25 = vld [vmem:[#allocation8 + $0x20] sm:$0xff] }
  0x17   :  { %103 = vmatpush.msra.mxu0 %v94_v5  ;;  %v84_v26 = vld [vmem:[#allocation6 + $0x8] sm:$0xff]  ;;  %v134_v27 = vld [vmem:[#allocation8 + $0x18] sm:$0xff]  ;;  %v83_v28 = vld [vmem:[#allocation6] sm:$0xff] }
  0x18   :  { %151 = vmatpush.msra.mxu1 %v142_v11  ;;  %v81_v29 = vld [vmem:[#allocation3] sm:$0xff]  ;;  %v133_v30 = vld [vmem:[#allocation8 + $0x10] sm:$0xff]  ;;  %v132_v31 = vld [vmem:[#allocation8 + $0x8] sm:$0xff] }
  0x19   :  { %104 = vmatpush.msra.mxu0 %v93_v8  ;;  %v131_v32 = vld [vmem:[#allocation8] sm:$0xff]  ;;  %v194_v33 = vld [vmem:[%s354_s2] ss:$0 sm:$0xff] }
  0x1a   :  { %152 = vmatpush.msra.mxu1 %v141_v13  ;;  %v195_v37 = vld [vmem:[%s356_s4] ss:$0 sm:$0xff] }
  0x1b   :  { %105 = vmatpush.msra.mxu0 %v92_v10 }
  0x1c   :  { %153 = vmatpush.msra.mxu1 %v140_v15 }
  0x1d   :  { %106 = vmatpush.msra.mxu0 %v91_v12 }
  0x1e   :  { %154 = vmatpush.msra.mxu1 %v139_v17 }
  0x1f   :  { %107 = vmatpush.msra.mxu0 %v90_v14 }
  0x20   :  { %155 = vmatpush.msra.mxu1 %v138_v19 }
  0x21   :  { %108 = vmatpush.msra.mxu0 %v89_v16 }
  0x22   :  { %156 = vmatpush.msra.mxu1 %v137_v21 }
  0x23   :  { %109 = vmatpush.msra.mxu0 %v88_v18 }
  0x24   :  { %157 = vmatpush.msra.mxu1 %v136_v23 }
  0x25   :  { %110 = vmatpush.msra.mxu0 %v87_v20 }
  0x26   :  { %158 = vmatpush.msra.mxu1 %v135_v25 }
  0x27   :  { %111 = vmatpush.msra.mxu0 %v86_v22 }
  0x28   :  { %159 = vmatpush.msra.mxu1 %v134_v27 }
  0x29   :  { %112 = vmatpush.msra.mxu0 %v85_v24 }
  0x2a   :  { %160 = vmatpush.msra.mxu1 %v133_v30 }
  0x2b   :  { %113 = vmatpush.msra.mxu0 %v84_v26 }
  0x2c   :  { %161 = vmatpush.msra.mxu1 %v132_v31 }
  0x2d   :  { %114 = vmatpush.msra.mxu0 %v83_v28 }
  0x2e   :  { %115 = vmatmul.f32.vlgmr.msra.gmra.mxu0 %v81_v29  ;;  %162 = vmatpush.msra.mxu1 %v131_v32 }
  0xab   :  { %v116_v34 = vpop.f32.mrf.mxu0 }
  0xac   :  { %v129_v35 = vadd.f32 %v194_v33, %v116_v34 }
  0xae   :  { %v130_v36 = vmax.f32 %v129_v35, 0.0 }
  0xb0   :  { %163 = vmatmul.f32.vlgmr.msra.gmra.mxu1 %v130_v36 }
 0x12d   :  { %v164_v38 = vpop.f32.mrf.mxu1 }
 0x12e   :  { %v168_v39 = vadd.f32 %v195_v37, %v164_v38 }
 0x130   :  { %169 = vst [vmem:[#allocation9] sm:$0xff] %v168_v39 }
 0x131   :  { %180 = dma.vmem_to_hbm [thread:$0]  %s176_s12, 128, %s178_s15, [#allocation5]  }
 0x132   :  { %296 = dma.done.wait [#allocation5], 128  }
 0x133   :  { %297 = vsyncadd [#allocation5], 4294967168 }
 0x134   :  { %185 = vsyncpa [#allocation4], 1 }
 0x135   :  { %186 = vsyncpa [#allocation7], 1 }
 0x136   :  { %187 = vsyncpa [#allocation5], 1 }

</bundles_post_ra>
